<compile_context>
chip_gen: v6e
topology: v6e:2x2x1
jax: 0.10.0
libtpu: 0.0.40
codegen_flags: <defaults>
</compile_context>

<pallas_src>
import jax
import jax.numpy as jnp
from jax.experimental import pallas as pl
from jax.experimental.pallas import tpu as pltpu


def _round_up(v, m):
    return ((v + m - 1) // m) * m


# -----------------------------------------------------------------------------
# Pallas kernel + wrapper
# -----------------------------------------------------------------------------
def resnet_forward(x, prep, *, tb=None):
    """Fused forward pass. x: [B, F] float32. prep: output of prepare_params()."""
    B, F = x.shape
    d = prep["dims"]
    assert F == d["F"], "input feature dim does not match params"
    H, O, Opad, L = d["H"], d["O"], d["Opad"], d["L"]

    # ---- batch tile selection -------------------------------------------------
    if tb is None:
        if B >= 512:
            tb = 256
        elif B >= 256:
            tb = 128          # keep grid >= 2 so v7x can use both TensorCores
        else:
            tb = B
    tb = max(8, min(_round_up(tb, 8), _round_up(B, 8), 256))
    Bpad = _round_up(B, tb)
    if Bpad != B:
        # zero-pad the batch tail; padded rows are sliced off after the call
        x = jnp.pad(x, ((0, Bpad - B), (0, 0)))
    grid = (Bpad // tb,)

    def kernel(x_ref, w1a_ref, w1b_ref, w2a_ref, w2b_ref, wf_ref, vec_ref, out_ref):
        cd = w1a_ref.dtype                      # matmul compute dtype (bf16 or f32)
        x0 = x_ref[...]                         # [tb, F] f32
        V = vec_ref[...]                        # [8, L] f32 packed bias slab
        b1a = V[0:1, :H]
        b1b = V[1:2, :F]
        b2a = V[2:3, :H]
        b2b = V[3:4, :F]
        bfv = V[4:5, :Opad]

        # block 1: (bn1 folded) -> dense1 -> ReLU -> dense2   (dropout = identity in eval)
        h = jnp.dot(x0.astype(cd), w1a_ref[...], preferred_element_type=jnp.float32) + b1a
        h = jnp.maximum(h, 0.0)
        r = jnp.dot(h.astype(cd), w1b_ref[...], preferred_element_type=jnp.float32) + b1b
        x1 = r + x0                             # residual: x += identity

        # block 2: (bn2 folded) -> dense1 -> ReLU -> dense2 (final bn folded) -> ReLU
        h = jnp.dot(x1.astype(cd), w2a_ref[...], preferred_element_type=jnp.float32) + b2a
        h = jnp.maximum(h, 0.0)
        y = jnp.dot(h.astype(cd), w2b_ref[...], preferred_element_type=jnp.float32) + b2b
        y = jnp.maximum(y, 0.0)                 # features2 activation

        # fc, output padded to Opad lanes -> unmasked lane-dense store
        out_ref[...] = (
            jnp.dot(y.astype(cd), wf_ref[...], preferred_element_type=jnp.float32) + bfv
        )

    def const(shape):
        return pl.BlockSpec(shape, lambda i: (0, 0))

    in_specs = [
        pl.BlockSpec((tb, F), lambda i: (i, 0)),     # x, tiled over batch
        const((F, H)),                               # block1 dense1 (bn1 folded)
        const((H, F)),                               # block1 dense2
        const((F, H)),                               # block2 dense1 (bn2 folded)
        const((H, F)),                               # block2 dense2 (final bn folded)
        const((F, Opad)),                            # fc (padded to 128 output lanes)
        const((8, L)),                               # packed bias slab (f32)
    ]
    out_specs = pl.BlockSpec((tb, Opad), lambda i: (i, 0))

    out = pl.pallas_call(
        kernel,
        out_shape=jax.ShapeDtypeStruct((Bpad, Opad), jnp.float32),
        grid=grid,
        in_specs=in_specs,
        out_specs=out_specs,
        # NOTE(v7x): at realistic tabular widths (F~1-2K), mark the constant-index weight
        # specs pipeline_mode=pl.Buffered(1) and set vmem_limit_bytes explicitly to fit the
        # 64 MiB VMEM; at this size the default double-buffering fits on every generation.
        compiler_params=pltpu.CompilerParams(dimension_semantics=("parallel",)),
    )(x, prep["w1a"], prep["w1b"], prep["w2a"], prep["w2b"], prep["wf"], prep["vecs"])

    return out[:B, :O]


# -----------------------------------------------------------------------------
# Parameters: torch-equivalent raw params, and kernel-ready folded/packed params
# -----------------------------------------------------------------------------
def init_raw_params(key, input_dim, hid_factor=2.0, output_dim=1):
    """Raw, torch-equivalent parameters.

    Linear weights are stored as [in, out] (== torch_weight.T). Linear biases are zero,
    matching ResNet.__init__ (nn.init.zeros_). BatchNorm running stats / affine are
    randomized (as after some training) so the BN folding path is actually exercised.
    """
    F = input_dim
    H = int(hid_factor * F)
    ks = jax.random.split(key, 8)

    def linear(k, n_in, n_out):
        bound = 1.0 / jnp.sqrt(jnp.float32(n_in))
        w = jax.random.uniform(k, (n_in, n_out), jnp.float32, -bound, bound)
        b = jnp.zeros((n_out,), jnp.float32)
        return w, b

    def bn(k, n):
        k1, k2, k3, k4 = jax.random.split(k, 4)
        gamma = jax.random.uniform(k1, (n,), jnp.float32, 0.5, 1.5)
        beta = 0.1 * jax.random.normal(k2, (n,), jnp.float32)
        mean = 0.1 * jax.random.normal(k3, (n,), jnp.float32)
        var = jax.random.uniform(k4, (n,), jnp.float32, 0.5, 1.5)
        return (gamma, beta, mean, var)

    raw = {}
    raw["bn1"] = bn(ks[0], F)
    raw["w1a"], raw["b1a"] = linear(ks[1], F, H)
    raw["w1b"], raw["b1b"] = linear(ks[2], H, F)
    raw["bn2"] = bn(ks[3], F)
    raw["w2a"], raw["b2a"] = linear(ks[4], F, H)
    raw["w2b"], raw["b2b"] = linear(ks[5], H, F)
    raw["bnf"] = bn(ks[6], F)
    raw["wf"], raw["bf"] = linear(ks[7], F, output_dim)
    raw["dims"] = dict(F=F, H=H, O=output_dim)
    return raw


def _bn_scale_shift(gamma, beta, mean, var, eps=1e-5):
    s = gamma / jnp.sqrt(var + eps)
    t = beta - mean * s
    return s, t


def prepare_params(raw, compute_dtype=jnp.bfloat16):
    """Fold BN affines into adjacent Linears, pad fc to 128 output lanes, pack biases."""
    F, H, O = raw["dims"]["F"], raw["dims"]["H"], raw["dims"]["O"]
    Opad = _round_up(O, 128)
    L = _round_up(max(H, F, Opad), 128)

    # bn1 -> block1.dense1 ; bn2 -> block2.dense1 (exact folds, done in f32)
    s1, t1 = _bn_scale_shift(*raw["bn1"])
    w1a = raw["w1a"] * s1[:, None]
    b1a = t1 @ raw["w1a"] + raw["b1a"]
    w1b, b1b = raw["w1b"], raw["b1b"]

    s2, t2 = _bn_scale_shift(*raw["bn2"])
    w2a = raw["w2a"] * s2[:, None]
    b2a = t2 @ raw["w2a"] + raw["b2a"]

    # features2.norm -> block2.dense2 (block2 output feeds the final BN directly)
    sf, tf = _bn_scale_shift(*raw["bnf"])
    w2b = raw["w2b"] * sf[None, :]
    b2b = raw["b2b"] * sf + tf

    wf = jnp.pad(raw["wf"], ((0, 0), (0, Opad - O)))
    bf = jnp.pad(raw["bf"], (0, Opad - O))

    def row(v):
        return jnp.pad(v, (0, L - v.shape[0]))

    rows = [row(b1a), row(b1b), row(b2a), row(b2b), row(bf)]
    rows += [jnp.zeros((L,), jnp.float32)] * (8 - len(rows))
    vecs = jnp.stack(rows).astype(jnp.float32)        # [8, L] f32, one DMA-friendly slab

    cd = compute_dtype
    return {
        "w1a": w1a.astype(cd), "w1b": w1b.astype(cd),
        "w2a": w2a.astype(cd), "w2b": w2b.astype(cd),
        "wf": wf.astype(cd),
        "vecs": vecs,
        "dims": dict(F=F, H=H, O=O, Opad=Opad, L=L),
    }


# -----------------------------------------------------------------------------
# References
# -----------------------------------------------------------------------------
def resnet_ref_f32(x, raw):
    """Pure-f32 reference matching the PyTorch module in eval mode (no folding)."""
    def bn(v, params, eps=1e-5):
        gamma, beta, mean, var = params
        return (v - mean) / jnp.sqrt(var + eps) * gamma + beta

    identity = x
    h = bn(x, raw["bn1"])
    h = jnp.maximum(h @ raw["w1a"] + raw["b1a"], 0.0)
    x1 = h @ raw["w1b"] + raw["b1b"]
    x1 = x1 + identity
    h = bn(x1, raw["bn2"])
    h = jnp.maximum(h @ raw["w2a"] + raw["b2a"], 0.0)
    x2 = h @ raw["w2b"] + raw["b2b"]
    x2 = jnp.maximum(bn(x2, raw["bnf"]), 0.0)
    return x2 @ raw["wf"] + raw["bf"]


def resnet_ref_matched(x, prep):
    """Same math as the kernel (folded params, compute-dtype matmul inputs, f32 accumulation)."""
    d = prep["dims"]
    F, H, O, Opad = d["F"], d["H"], d["O"], d["Opad"]
    V = prep["vecs"]
    b1a, b1b = V[0:1, :H], V[1:2, :F]
    b2a, b2b = V[2:3, :H], V[3:4, :F]
    bfv = V[4:5, :Opad]
    cd = prep["w1a"].dtype

    def dot(a, w):
        return jnp.dot(a.astype(cd), w, preferred_element_type=jnp.float32)

    h = jnp.maximum(dot(x, prep["w1a"]) + b1a, 0.0)
    x1 = dot(h, prep["w1b"]) + b1b + x
    h = jnp.maximum(dot(x1, prep["w2a"]) + b2a, 0.0)
    y = jnp.maximum(dot(h, prep["w2b"]) + b2b, 0.0)
    return (dot(y, prep["wf"]) + bfv)[:, :O]


if __name__ == "__main__":
    key = jax.random.PRNGKey(0)
    kx, kp = jax.random.split(key)

    B, INPUT_DIM, OUTPUT_DIM = 16, 32, 1
    x = jax.random.normal(kx, (B, INPUT_DIM), jnp.float32)

    raw = init_raw_params(kp, INPUT_DIM, hid_factor=2.0, output_dim=OUTPUT_DIM)
    prep_bf16 = prepare_params(raw, compute_dtype=jnp.bfloat16)   # production (MXU bf16) path
    prep_f32 = prepare_params(raw, compute_dtype=jnp.float32)     # f32 path for strict check

    out = resnet_forward(x, prep_bf16)
    out = jax.block_until_ready(out)
    assert out.shape == (B, OUTPUT_DIM)

    out_f32 = jax.block_until_ready(resnet_forward(x, prep_f32))
    ref_f32 = resnet_ref_f32(x, raw)
    ref_matched = resnet_ref_matched(x, prep_bf16)

    if not jnp.allclose(out_f32, ref_f32, atol=1e-4, rtol=1e-4):
        raise AssertionError("f32 Pallas kernel does not match torch-equivalent f32 reference")
    if not jnp.allclose(out, ref_matched, atol=2e-3, rtol=2e-3):
        raise AssertionError("bf16 Pallas kernel does not match matched-precision reference")

    # TODO(synk): Dropout / GaussianNoise are training-mode stochastic ops; they are identity
    # at inference and intentionally not emitted in the kernel.
    print("KERNEL_OK")
</pallas_src>

<mosaic_0001>
module attributes {stable_mosaic.version = 11 : i64} {
  func.func @kernel(%arg0: i32, %arg1: memref<16x32xf32, #tpu.memory_space<vmem>>, %arg2: memref<32x64xbf16, #tpu.memory_space<vmem>>, %arg3: memref<64x32xbf16, #tpu.memory_space<vmem>>, %arg4: memref<32x64xbf16, #tpu.memory_space<vmem>>, %arg5: memref<64x32xbf16, #tpu.memory_space<vmem>>, %arg6: memref<32x128xbf16, #tpu.memory_space<vmem>>, %arg7: memref<8x128xf32, #tpu.memory_space<vmem>>, %arg8: memref<16x128xf32, #tpu.memory_space<vmem>>) attributes {dimension_semantics = [#tpu.dimension_semantics<parallel>], iteration_bounds = array<i64: 1>, scalar_prefetch = 0 : i64, scratch_operands = 0 : i64, tpu.core_type = #tpu.core_type<tc>, window_params = [{transform_indices = @transform_0, window_bounds = array<i64: 16, 32>}, {pipeline_mode = #tpu.pipeline_mode<synchronous>, transform_indices = @transform_1, window_bounds = array<i64: 32, 64>}, {pipeline_mode = #tpu.pipeline_mode<synchronous>, transform_indices = @transform_2, window_bounds = array<i64: 64, 32>}, {pipeline_mode = #tpu.pipeline_mode<synchronous>, transform_indices = @transform_3, window_bounds = array<i64: 32, 64>}, {pipeline_mode = #tpu.pipeline_mode<synchronous>, transform_indices = @transform_4, window_bounds = array<i64: 64, 32>}, {pipeline_mode = #tpu.pipeline_mode<synchronous>, transform_indices = @transform_5, window_bounds = array<i64: 32, 128>}, {pipeline_mode = #tpu.pipeline_mode<synchronous>, transform_indices = @transform_6, window_bounds = array<i64: 8, 128>}, {transform_indices = @transform_7, window_bounds = array<i64: 16, 128>}]} {
    %c0 = arith.constant 0 : index
    %c0_0 = arith.constant 0 : index
    %0 = vector.load %arg1[%c0, %c0_0] : memref<16x32xf32, #tpu.memory_space<vmem>>, vector<16x32xf32>
    %c0_1 = arith.constant 0 : index
    %c0_2 = arith.constant 0 : index
    %1 = vector.load %arg7[%c0_1, %c0_2] : memref<8x128xf32, #tpu.memory_space<vmem>>, vector<8x128xf32>
    %2 = vector.extract_strided_slice %1 {offsets = [0, 0], sizes = [1, 64], strides = [1, 1]} : vector<8x128xf32> to vector<1x64xf32>
    %3 = vector.extract_strided_slice %1 {offsets = [1, 0], sizes = [1, 32], strides = [1, 1]} : vector<8x128xf32> to vector<1x32xf32>
    %4 = vector.extract_strided_slice %1 {offsets = [2, 0], sizes = [1, 64], strides = [1, 1]} : vector<8x128xf32> to vector<1x64xf32>
    %5 = vector.extract_strided_slice %1 {offsets = [3, 0], sizes = [1, 32], strides = [1, 1]} : vector<8x128xf32> to vector<1x32xf32>
    %6 = vector.extract_strided_slice %1 {offsets = [4, 0], sizes = [1, 128], strides = [1, 1]} : vector<8x128xf32> to vector<1x128xf32>
    %7 = arith.truncf %0 : vector<16x32xf32> to vector<16x32xbf16>
    %c0_3 = arith.constant 0 : index
    %c0_4 = arith.constant 0 : index
    %8 = vector.load %arg2[%c0_3, %c0_4] : memref<32x64xbf16, #tpu.memory_space<vmem>>, vector<32x64xbf16>
    %cst = arith.constant dense<0.000000e+00> : vector<16x64xf32>
    %9 = tpu.matmul %7, %8, %cst {dimension_numbers = #tpu.dot_dimension_numbers<[1], [0], [0], [1], [0, 0, 1, 1], [], []>} : vector<16x32xbf16>, vector<32x64xbf16>, vector<16x64xf32> -> vector<16x64xf32>
    %10 = vector.broadcast %2 : vector<1x64xf32> to vector<16x64xf32>
    %11 = arith.addf %9, %10 : vector<16x64xf32>
    %cst_5 = arith.constant 0.000000e+00 : f32
    %12 = vector.broadcast %cst_5 : f32 to vector<16x64xf32>
    %13 = arith.maximumf %11, %12 : vector<16x64xf32>
    %14 = arith.truncf %13 : vector<16x64xf32> to vector<16x64xbf16>
    %c0_6 = arith.constant 0 : index
    %c0_7 = arith.constant 0 : index
    %15 = vector.load %arg3[%c0_6, %c0_7] : memref<64x32xbf16, #tpu.memory_space<vmem>>, vector<64x32xbf16>
    %cst_8 = arith.constant dense<0.000000e+00> : vector<16x32xf32>
    %16 = tpu.matmul %14, %15, %cst_8 {dimension_numbers = #tpu.dot_dimension_numbers<[1], [0], [0], [1], [0, 0, 1, 1], [], []>} : vector<16x64xbf16>, vector<64x32xbf16>, vector<16x32xf32> -> vector<16x32xf32>
    %17 = vector.broadcast %3 : vector<1x32xf32> to vector<16x32xf32>
    %18 = arith.addf %16, %17 : vector<16x32xf32>
    %19 = arith.addf %18, %0 : vector<16x32xf32>
    %20 = arith.truncf %19 : vector<16x32xf32> to vector<16x32xbf16>
    %c0_9 = arith.constant 0 : index
    %c0_10 = arith.constant 0 : index
    %21 = vector.load %arg4[%c0_9, %c0_10] : memref<32x64xbf16, #tpu.memory_space<vmem>>, vector<32x64xbf16>
    %cst_11 = arith.constant dense<0.000000e+00> : vector<16x64xf32>
    %22 = tpu.matmul %20, %21, %cst_11 {dimension_numbers = #tpu.dot_dimension_numbers<[1], [0], [0], [1], [0, 0, 1, 1], [], []>} : vector<16x32xbf16>, vector<32x64xbf16>, vector<16x64xf32> -> vector<16x64xf32>
    %23 = vector.broadcast %4 : vector<1x64xf32> to vector<16x64xf32>
    %24 = arith.addf %22, %23 : vector<16x64xf32>
    %cst_12 = arith.constant 0.000000e+00 : f32
    %25 = vector.broadcast %cst_12 : f32 to vector<16x64xf32>
    %26 = arith.maximumf %24, %25 : vector<16x64xf32>
    %27 = arith.truncf %26 : vector<16x64xf32> to vector<16x64xbf16>
    %c0_13 = arith.constant 0 : index
    %c0_14 = arith.constant 0 : index
    %28 = vector.load %arg5[%c0_13, %c0_14] : memref<64x32xbf16, #tpu.memory_space<vmem>>, vector<64x32xbf16>
    %cst_15 = arith.constant dense<0.000000e+00> : vector<16x32xf32>
    %29 = tpu.matmul %27, %28, %cst_15 {dimension_numbers = #tpu.dot_dimension_numbers<[1], [0], [0], [1], [0, 0, 1, 1], [], []>} : vector<16x64xbf16>, vector<64x32xbf16>, vector<16x32xf32> -> vector<16x32xf32>
    %30 = vector.broadcast %5 : vector<1x32xf32> to vector<16x32xf32>
    %31 = arith.addf %29, %30 : vector<16x32xf32>
    %cst_16 = arith.constant 0.000000e+00 : f32
    %32 = vector.broadcast %cst_16 : f32 to vector<16x32xf32>
    %33 = arith.maximumf %31, %32 : vector<16x32xf32>
    %34 = arith.truncf %33 : vector<16x32xf32> to vector<16x32xbf16>
    %c0_17 = arith.constant 0 : index
    %c0_18 = arith.constant 0 : index
    %35 = vector.load %arg6[%c0_17, %c0_18] : memref<32x128xbf16, #tpu.memory_space<vmem>>, vector<32x128xbf16>
    %cst_19 = arith.constant dense<0.000000e+00> : vector<16x128xf32>
    %36 = tpu.matmul %34, %35, %cst_19 {dimension_numbers = #tpu.dot_dimension_numbers<[1], [0], [0], [1], [0, 0, 1, 1], [], []>} : vector<16x32xbf16>, vector<32x128xbf16>, vector<16x128xf32> -> vector<16x128xf32>
    %37 = vector.broadcast %6 : vector<1x128xf32> to vector<16x128xf32>
    %38 = arith.addf %36, %37 : vector<16x128xf32>
    %c0_20 = arith.constant 0 : index
    %c0_21 = arith.constant 0 : index
    %39 = vector.load %arg8[%c0_20, %c0_21] : memref<16x128xf32, #tpu.memory_space<vmem>>, vector<16x128xf32>
    tpu.vector_store %arg8[%c0_20, %c0_21], %38 {strides = array<i32>} : memref<16x128xf32, #tpu.memory_space<vmem>>, vector<16x128xf32>,
    return
  }
  func.func @transform_0(%arg0: i32) -> (i32, i32) {
    %c0_i32 = arith.constant 0 : i32
    %c0_i32_0 = arith.constant 0 : i32
    return %arg0, %c0_i32 : i32, i32
  }
  func.func @transform_1(%arg0: i32) -> (i32, i32) {
    %c0_i32 = arith.constant 0 : i32
    %c0_i32_0 = arith.constant 0 : i32
    %c0_i32_1 = arith.constant 0 : i32
    return %c0_i32, %c0_i32_0 : i32, i32
  }
  func.func @transform_2(%arg0: i32) -> (i32, i32) {
    %c0_i32 = arith.constant 0 : i32
    %c0_i32_0 = arith.constant 0 : i32
    %c0_i32_1 = arith.constant 0 : i32
    return %c0_i32, %c0_i32_0 : i32, i32
  }
  func.func @transform_3(%arg0: i32) -> (i32, i32) {
    %c0_i32 = arith.constant 0 : i32
    %c0_i32_0 = arith.constant 0 : i32
    %c0_i32_1 = arith.constant 0 : i32
    return %c0_i32, %c0_i32_0 : i32, i32
  }
  func.func @transform_4(%arg0: i32) -> (i32, i32) {
    %c0_i32 = arith.constant 0 : i32
    %c0_i32_0 = arith.constant 0 : i32
    %c0_i32_1 = arith.constant 0 : i32
    return %c0_i32, %c0_i32_0 : i32, i32
  }
  func.func @transform_5(%arg0: i32) -> (i32, i32) {
    %c0_i32 = arith.constant 0 : i32
    %c0_i32_0 = arith.constant 0 : i32
    %c0_i32_1 = arith.constant 0 : i32
    return %c0_i32, %c0_i32_0 : i32, i32
  }
  func.func @transform_6(%arg0: i32) -> (i32, i32) {
    %c0_i32 = arith.constant 0 : i32
    %c0_i32_0 = arith.constant 0 : i32
    %c0_i32_1 = arith.constant 0 : i32
    return %c0_i32, %c0_i32_0 : i32, i32
  }
  func.func @transform_7(%arg0: i32) -> (i32, i32) {
    %c0_i32 = arith.constant 0 : i32
    %c0_i32_0 = arith.constant 0 : i32
    return %arg0, %c0_i32 : i32, i32
  }
}

</mosaic_0001>

<bundles_post_ra>
// kernel: tpu_custom_call.1
= control target key start
LH: loop header
LB: loop body
LE: loop exit
PB: predicated region body
PF: predicated region fallthrough
CT: control target
= control target key end

     0   :  { %v543_v1 = vmov 0.0   ;;  %vm544_vm0 = vmmov 0   ;;  %vm52_vm1 = vcmask 261120   ;;  %s685_s0 = inlined_call_operand.vmem [shape: f32[16,32], index: 0, kind: input, shape index: {}]   ;;  %s686_s1 = inlined_call_operand.vmem [shape: bf16[32,64], index: 1, kind: input, shape index: {}]   ;;  %s687_s2 = inlined_call_operand.vmem [shape: bf16[64,32], index: 2, kind: input, shape index: {}]   ;;  %s688_s3 = inlined_call_operand.vmem [shape: bf16[32,64], index: 3, kind: input, shape index: {}]   ;;  %s689_s4 = inlined_call_operand.vmem [shape: bf16[64,32], index: 4, kind: input, shape index: {}]   ;;  %s690_s5 = inlined_call_operand.vmem [shape: bf16[32,128], index: 5, kind: input, shape index: {}]   ;;  %s691_s6 = inlined_call_operand.vmem [shape: f32[8,128], index: 6, kind: input, shape index: {}]   ;;  %s692_s7 = inlined_call_operand.hbm [shape: f32[16,128], index: 7, kind: output, shape index: {}]  }
   0x1   :  { %v507_v0 = vld [vmem:[%s686_s1 + $0x8] sm:$0xff]   ;;  %454 = vmatprep.subr.bf16.mxu0 %v543_v1  ;;  %v508_v2 = vld [vmem:[%s686_s1] sm:$0xff]   ;;  %462 = vmatprep.subr.bf16.mxu1 %v543_v1  ;;  %v509_v5 = vld [vmem:[%s687_s2 + $0x18] sm:$0xff]  }
   0x2   :  { %455 = vmatpush3.bf16.msra.mxu0 %v507_v0  ;;  %458 = vmatprep.mubr.msk.bf16.mxu0 %vm544_vm0, %v543_v1  ;;  %v28_v3 = vld [vmem:[%s685_s0] sm:$0xff]  ;;  %v29_v4 = vld [vmem:[%s685_s0 + $0x8] sm:$0xff] }
   0x3   :  { %456 = vmatprep.subr.bf16.mxu0 %v543_v1  ;;  %470 = vmatprep.mubr.msk.bf16.mxu1 %vm544_vm0, %v543_v1  ;;  %v31_v6 = vpack.c.bf16 %v29_v4, %v28_v3 }
   0x4   :  { %463 = vmatpush3.bf16.msra.mxu1 %v509_v5 }
   0x5   :  { %464 = vmatprep.subr.bf16.mxu1 %v543_v1 }
   0x6   :  { %457 = vmatpush3.bf16.msra.mxu0 %v508_v2 }
   0x7   :  { %474 = vmatprep.subr.bf16.mxu0 %v543_v1 }
   0x9   :  { %459 = vmatmul.mubr.msk.bf16.vlgmr.msra.gmra.mxu0 %vm52_vm1, %v31_v6 }
   0xa   :  { %478 = vmatprep.mubr.msk.bf16.mxu0 %vm544_vm0, %v543_v1 }
   0xb   :  { %12 = vsyncpa [#allocation3], 0  ;;  %v510_v7 = vld [vmem:[%s687_s2 + $0x10] sm:$0xff]   ;;  %v511_v8 = vld [vmem:[%s687_s2 + $0x8] sm:$0xff]   ;;  %v36_v10 = vlaneseq  ;;  %vm136_vm2 = vcmask 523264  }
   0xc   :  { %465 = vmatpush3.bf16.msra.mxu1 %v510_v7  ;;  %v512_v9 = vld [vmem:[%s687_s2] sm:$0xff]   ;;  %v513_v24 = vld [vmem:[%s688_s3 + $0x8] sm:$0xff]   ;;  %v515_v36 = vld [vmem:[%s689_s4 + $0x18] sm:$0xff]  }
   0xd   :  { %466 = vmatprep.subr.bf16.mxu1 %v543_v1  ;;  %v627_v11 = vshrl.u32 %v36_v10, 7  ;;  %v633_v13 = vld [vmem:[%s691_s6] sm:$0xff]  ;;  %475 = vmatpush3.bf16.msra.mxu0 %v513_v24  ;;  %v516_v38 = vld [vmem:[%s689_s4 + $0x10] sm:$0xff]   ;;  %v517_v39 = vld [vmem:[%s689_s4 + $0x8] sm:$0xff]  }
   0xe   :  { %476 = vmatprep.subr.bf16.mxu0 %v543_v1  ;;  %v514_v25 = vld [vmem:[%s688_s3] sm:$0xff]   ;;  %v519_v52 = vld [vmem:[%s690_s5 + $0x8] sm:$0xff]  }
   0xf   :  { %v38_v12 = vsub.s32 0, %v627_v11  ;;  %v110_v26 = vsub.s32 1, %v627_v11  ;;  %v518_v40 = vld [vmem:[%s689_s4] sm:$0xff]   ;;  %v190_v41 = vsub.s32 2, %v627_v11  ;;  %v261_v54 = vsub.s32 3, %v627_v11 }
  0x10   :  { %467 = vmatpush3.bf16.msra.mxu1 %v511_v8  ;;  %v520_v53 = vld [vmem:[%s690_s5] sm:$0xff]   ;;  %s545_s5 = smov [#allocation2]  }
  0x11   :  { %468 = vmatprep.subr.bf16.mxu1 %v543_v1  ;;  %v39_v14 = vrot.slane %v633_v13, %v38_v12  ;;  %477 = vmatpush3.bf16.msra.mxu0 %v514_v25  ;;  %v111_v27 = vrot.slane %v633_v13, %v110_v26  ;;  %v191_v42 = vrot.slane %v633_v13, %v190_v41  ;;  %s405_s29 = sshll.u32 %s545_s5, 4  ;;  %s406_s29 = int_to_ptr.vmem [resolvable:$true] %s405_s29 }
  0x12   :  { %482 = vmatprep.subr.bf16.mxu0 %v543_v1  ;;  %v262_v55 = vrot.slane %v633_v13, %v261_v54  ;;  %s521_s30 = scalar_lea.vmem %s406_s29, 256  ;;  %p526_p1 = scmp.lt.s32.totalorder %s406_s29, %s406_s29 }
  0x13   :  { %p522_p0 = scmp.ne.s32.totalorder %s406_s29, %s521_s30  ;;  %p527_p2 = scmp.lt.s32.totalorder %s521_s30, %s521_s30 }
  0x14   :  { %469 = vmatpush3.bf16.msra.mxu1 %v512_v9 }
  0x15   :  { %494 = vmatprep.subr.bf16.mxu1 %v543_v1  ;;  %p528_p3 = por %p527_p2, %p526_p1 }
  0x17   :  { %p529_p4 = pnand %p528_p3, %p522_p0 }
  0xc9   :  { %v90_v15 = vpop.f32.mrf.mxu0 }
  0xca   :  { %v91_v17 = vadd.f32 %v90_v15, %v39_v14 }
  0xcb   :  { %v460_v16 = vpop.f32.mrf.mxu0 }
  0xcc   :  { %v97_v21 = vmax.f32 %v91_v17, 0.0 }
  0xcd   :  { %v93_v18 = vpop.f32.mrf.mxu0 }
  0xce   :  { %v94_v19 = vadd.f32 %v93_v18, %v39_v14 }
  0xcf   :  { %v461_v20 = vpop.f32.mrf.mxu0 }
  0xd0   :  { %v98_v22 = vmax.f32 %v94_v19, 0.0 }
  0xd2   :  { %v99_v23 = vpack.c.bf16 %v98_v22, %v97_v21 }
  0xd4   :  { %471 = vmatmul.mubr.msk.bf16.vlgmr.msra.gmra.mxu1 %vm136_vm2, %v99_v23 }
  0xd5   :  { %498 = vmatprep.mubr.msk.bf16.mxu1 %vm544_vm0, %v543_v1  ;;  %495 = vmatpush3.bf16.msra.mxu1 %v519_v52 }
  0xd6   :  { %496 = vmatprep.subr.bf16.mxu1 %v543_v1 }
  0xd9   :  { %497 = vmatpush3.bf16.msra.mxu1 %v520_v53 }
 0x194   :  { %v174_v28 = vpop.f32.mrf.mxu1 }
 0x195   :  { %v175_v30 = vadd.f32 %v174_v28, %v111_v27 }
 0x196   :  { %v472_v29 = vpop.f32.mrf.mxu1 }
 0x197   :  { %v181_v34 = vadd.f32 %v175_v30, %v28_v3 }
 0x198   :  { %v177_v31 = vpop.f32.mrf.mxu1 }
 0x199   :  { %v178_v32 = vadd.f32 %v177_v31, %v111_v27 }
 0x19a   :  { %v473_v33 = vpop.f32.mrf.mxu1 }
 0x19b   :  { %v182_v35 = vadd.f32 %v178_v32, %v29_v4 }
 0x19d   :  { %v183_v37 = vpack.c.bf16 %v182_v35, %v181_v34 }
 0x19f   :  { %479 = vmatmul.mubr.msk.bf16.vlgmr.msra.gmra.mxu0 %vm52_vm1, %v183_v37 }
 0x1a0   :  { %483 = vmatpush3.bf16.msra.mxu0 %v515_v36  ;;  %490 = vmatprep.mubr.msk.bf16.mxu0 %vm544_vm0, %v543_v1 }
 0x1a1   :  { %484 = vmatprep.subr.bf16.mxu0 %v543_v1 }
 0x1a4   :  { %485 = vmatpush3.bf16.msra.mxu0 %v516_v38 }
 0x1a5   :  { %486 = vmatprep.subr.bf16.mxu0 %v543_v1 }
 0x1a8   :  { %487 = vmatpush3.bf16.msra.mxu0 %v517_v39 }
 0x1a9   :  { %488 = vmatprep.subr.bf16.mxu0 %v543_v1  ;;  %v340_v1 = vsub.s32 4, %v627_v11 }
 0x1ab   :  { %v341_v2 = vrot.slane %v633_v13, %v340_v1 }
 0x1ac   :  { %489 = vmatpush3.bf16.msra.mxu0 %v518_v40 }
 0x25f   :  { %v241_v43 = vpop.f32.mrf.mxu0 }
 0x260   :  { %v242_v45 = vadd.f32 %v241_v43, %v191_v42 }
 0x261   :  { %v480_v44 = vpop.f32.mrf.mxu0 }
 0x262   :  { %v248_v49 = vmax.f32 %v242_v45, 0.0 }
 0x263   :  { %v244_v46 = vpop.f32.mrf.mxu0 }
 0x264   :  { %v245_v47 = vadd.f32 %v244_v46, %v191_v42 }
 0x265   :  { %v481_v48 = vpop.f32.mrf.mxu0 }
 0x266   :  { %v249_v50 = vmax.f32 %v245_v47, 0.0 }
 0x268   :  { %v250_v51 = vpack.c.bf16 %v249_v50, %v248_v49 }
 0x26a   :  { %491 = vmatmul.mubr.msk.bf16.vlgmr.msra.gmra.mxu0 %vm136_vm2, %v250_v51 }
 0x32a   :  { %v324_v56 = vpop.f32.mrf.mxu0 }
 0x32b   :  { %v325_v58 = vadd.f32 %v324_v56, %v262_v55 }
 0x32c   :  { %v492_v57 = vpop.f32.mrf.mxu0 }
 0x32d   :  { %v331_v62 = vmax.f32 %v325_v58, 0.0 }
 0x32e   :  { %v327_v59 = vpop.f32.mrf.mxu0 }
 0x32f   :  { %v328_v60 = vadd.f32 %v327_v59, %v262_v55 }
 0x330   :  { %v493_v61 = vpop.f32.mrf.mxu0 }
 0x331   :  { %v332_v63 = vmax.f32 %v328_v60, 0.0 }
 0x333   :  { %v333_v0 = vpack.c.bf16 %v332_v63, %v331_v62 }
 0x335   :  { %499 = vmatmul.mubr.msk.bf16.vlgmr.msra.gmra.mxu1 %vm52_vm1, %v333_v0 }
 0x3f5   :  { %v391_v3 = vpop.f32.mrf.mxu1 }
 0x3f6   :  { %v392_v4 = vadd.f32 %v391_v3, %v341_v2 }
 0x3f7   :  { %v500_v5 = vpop.f32.mrf.mxu1 }
 0x3f8   :  { %398 = vst [vmem:[#allocation2] sm:$0xff] %v392_v4 }
 0x3f9   :  { %v394_v6 = vpop.f32.mrf.mxu1 }
 0x3fa   :  { %v395_v7 = vadd.f32 %v394_v6, %v341_v2 }
 0x3fb   :  { %v501_v8 = vpop.f32.mrf.mxu1 }
 0x3fc   :  { %399 = vst [vmem:[#allocation2 + $0x8] sm:$0xff] %v395_v7 }
 0x3fd   :  { %532 = shalt.err (!%p529_p4)
}
 0x3fe   :  { %s546_s8 = smov 128   ;;  %s547_s9 = smov 8  }
 0x3ff   :  { %411 = dma.vmem_to_hbm [thread:$0]  %s406_s29, 256, %s692_s7, [#allocation3], %s546_s8, %s546_s8, %s547_s9  }
 0x400   :  { %541 = dma.done.wait [#allocation3], 256  }
 0x401   :  { %542 = vsyncadd [#allocation3], 4294967040 }
 0x402   :  { %415 = vsyncpa [#allocation3], 1 }

</bundles_post_ra>
